<compile_context>
chip_gen: v7x
topology: tpu7x:2x2x1
jax: 0.10.0
libtpu: 0.0.40
codegen_flags: <defaults>
</compile_context>

<pallas_src>
import functools

import jax
import jax.numpy as jnp
from jax.experimental import pallas as pl
from jax.experimental.pallas import tpu as pltpu


def _round_up(x, mult):
    return ((x + mult - 1) // mult) * mult


def _fact_emb_kernel(codes_ref, hi_ref, lo_ref, o_ref, acc_ref, *, m_codes, tv):
    """One (token-block i, codebook-slice k) grid step.

    codes_ref: VMEM (TB, M)  int32  codebook row ids per token (same block over k)
    hi_ref:    VMEM (TV, E)  bf16   high half of the f32 codebook slice k
    lo_ref:    VMEM (TV, E)  bf16   low (residual) half of the codebook slice k
    o_ref:     VMEM (TB, E)  f32    output tile (written on the last k step)
    acc_ref:   VMEM (TB, E)  f32    accumulator, persists across the k axis
    """
    k = pl.program_id(1)

    @pl.when(k == 0)
    def _():
        acc_ref[...] = jnp.zeros_like(acc_ref)

    tb = o_ref.shape[0]
    codes = codes_ref[...]                                         # load tile once
    # Column ids covered by this codebook slice.
    col = k * tv + jax.lax.broadcasted_iota(jnp.int32, (tb, tv), 1)

    # (TB, TV) one-hot *count* slice: entry [t, c] = #times code c appears among the
    # M codes of token t (duplicates sum -> matches reference .sum(-2)).  Built in
    # f32 (portable to v5e); counts <= M are exact in bf16 so the cast is lossless.
    onehot = (codes[:, 0:1] == col).astype(jnp.float32)
    for j in range(1, m_codes):                                    # M is small & static
        onehot = onehot + (codes[:, j:j + 1] == col).astype(jnp.float32)
    onehot = onehot.astype(jnp.bfloat16)

    # Two single-pass bf16 MXU matmuls (hi + lo split of the f32 table), f32 accum:
    # ~3x fewer MXU passes than Precision.HIGHEST at equivalent accuracy.
    acc_ref[...] += (
        jnp.dot(onehot, hi_ref[...], preferred_element_type=jnp.float32)
        + jnp.dot(onehot, lo_ref[...], preferred_element_type=jnp.float32)
    )

    @pl.when(k == pl.num_programs(1) - 1)
    def _():
        o_ref[...] = acc_ref[...].astype(o_ref.dtype)


def factorized_embeddings_forward(indices, emb_table, index_map, *, tb=256, tv=256):
    """indices: (B, S) int32; emb_table: (V, E) f32; index_map: (W, M) int32."""
    b, s = indices.shape
    v, e = emb_table.shape
    _, m = index_map.shape
    n = b * s

    # --- word -> code gather done by XLA (cheap; keeps SMEM out of the picture) ---
    codes = index_map[indices.reshape(-1)].astype(jnp.int32)       # (N, M)

    # --- token-block padding ---------------------------------------------------
    tb = min(tb, _round_up(n, 8))           # don't over-pad tiny token counts
    n_pad = _round_up(n, tb)
    if n_pad != n:
        # padded tokens get code 0 (a valid row); their outputs are sliced off below
        codes = jnp.pad(codes, ((0, n_pad - n), (0, 0)))

    # --- table padding + hi/lo bf16 split --------------------------------------
    e_pad = _round_up(e, 128)               # lane-dense output stores
    v_pad = _round_up(v, tv)                # contraction tiles aligned to MXU depth
    tab_hi = emb_table.astype(jnp.bfloat16)
    tab_lo = (emb_table - tab_hi.astype(jnp.float32)).astype(jnp.bfloat16)
    if (v_pad, e_pad) != (v, e):
        pad = ((0, v_pad - v), (0, e_pad - e))
        tab_hi = jnp.pad(tab_hi, pad)
        tab_lo = jnp.pad(tab_lo, pad)

    n_i = n_pad // tb
    n_k = v_pad // tv

    # --- cost / VMEM budgeting ---------------------------------------------------
    # 2 bf16 MXU passes (hi + lo) over (N_pad, V_pad) x (V_pad, E_pad).
    flops = 2 * 2 * n_pad * v_pad * e_pad
    bytes_accessed = (n_i * v_pad * e_pad * 2 * 2    # hi+lo slices, refetched per token block
                      + n_pad * m * 4                # codes
                      + n_pad * e_pad * 4)           # output
    vmem_bytes = (2 * tb * m * 4                     # code blocks (double-buffered)
                  + 2 * 2 * tv * e_pad * 2           # hi+lo table slices (double-buffered)
                  + 2 * tb * e_pad * 4               # output blocks
                  + tb * e_pad * 4                   # f32 accumulator scratch
                  + tb * tv * 6                      # one-hot slice (f32 build + bf16)
                  + (4 << 20))                       # slack
    try:
        vmem_cap = pltpu.get_tpu_info().vmem_capacity_bytes   # 64 MiB/TC on v7x, 128 MiB v5e/v6e
    except Exception:
        vmem_cap = 64 << 20
    vmem_limit = max(16 << 20, min(max(vmem_bytes, 16 << 20), int(0.8 * vmem_cap)))

    out_flat = pl.pallas_call(
        functools.partial(_fact_emb_kernel, m_codes=m, tv=tv),
        out_shape=jax.ShapeDtypeStruct((n_pad, e_pad), emb_table.dtype),
        grid_spec=pltpu.PrefetchScalarGridSpec(
            num_scalar_prefetch=0,
            grid=(n_i, n_k),
            in_specs=[
                pl.BlockSpec((tb, m), lambda i, k: (i, 0)),        # per-block codes
                pl.BlockSpec((tv, e_pad), lambda i, k: (k, 0)),    # codebook slice (hi)
                pl.BlockSpec((tv, e_pad), lambda i, k: (k, 0)),    # codebook slice (lo)
            ],
            out_specs=pl.BlockSpec((tb, e_pad), lambda i, k: (i, 0)),
            scratch_shapes=[pltpu.VMEM((tb, e_pad), jnp.float32)],
        ),
        compiler_params=pltpu.CompilerParams(
            dimension_semantics=("parallel", "arbitrary"),   # token blocks independent
            vmem_limit_bytes=vmem_limit,
        ),
        cost_estimate=pl.CostEstimate(
            flops=flops, transcendentals=0, bytes_accessed=bytes_accessed),
    )(codes, tab_hi, tab_lo)

    return out_flat[:n, :e].reshape(b, s, e)


def _reference_forward(indices, emb_table, index_map):
    exp_indices = index_map[indices.reshape(-1)]           # (N, M)
    exp_embs = emb_table[exp_indices]                      # (N, M, E)
    exp_embs = exp_embs.sum(-2)                            # (N, E)
    return exp_embs.reshape(indices.shape[0], indices.shape[1], -1)


if __name__ == "__main__":
    # Small, deterministic synthetic setup (no checkpoint loading).
    B, S = 2, 8          # batch, sequence  -> N = 16 tokens
    V, E = 32, 128       # codebook rows, embedding dim (E lane-dense)
    W, M = 50, 4         # vocabulary size, codes per word

    key = jax.random.PRNGKey(0)
    k_tab, k_map, k_idx = jax.random.split(key, 3)

    emb_table = jax.random.normal(k_tab, (V, E), dtype=jnp.float32)
    index_map = jax.random.randint(k_map, (W, M), 0, V, dtype=jnp.int32)
    indices = jax.random.randint(k_idx, (B, S), 0, W, dtype=jnp.int32)

    out = factorized_embeddings_forward(indices, emb_table, index_map)
    out = jax.block_until_ready(out)

    ref = _reference_forward(indices, emb_table, index_map)
    assert out.shape == (B, S, E)
    assert jnp.allclose(out, ref, atol=2e-4, rtol=2e-4), "mismatch vs reference"

    print("KERNEL_OK")
</pallas_src>

<mosaic_0001>
module attributes {stable_mosaic.version = 11 : i64} {
  func.func @_fact_emb_kernel(%arg0: i32, %arg1: i32, %arg2: memref<16x4xi32, #tpu.memory_space<vmem>>, %arg3: memref<256x128xbf16, #tpu.memory_space<vmem>>, %arg4: memref<256x128xbf16, #tpu.memory_space<vmem>>, %arg5: memref<16x128xf32, #tpu.memory_space<vmem>>, %arg6: memref<16x128xf32, #tpu.memory_space<vmem>>) attributes {dimension_semantics = [#tpu.dimension_semantics<parallel>, #tpu.dimension_semantics<arbitrary>], iteration_bounds = array<i64: 1, 1>, scalar_prefetch = 0 : i64, scratch_operands = 1 : i64, tpu.core_type = #tpu.core_type<tc>, window_params = [{transform_indices = @transform_0, window_bounds = array<i64: 16, 4>}, {transform_indices = @transform_1, window_bounds = array<i64: 256, 128>}, {transform_indices = @transform_2, window_bounds = array<i64: 256, 128>}, {transform_indices = @transform_3, window_bounds = array<i64: 16, 128>}]} {
    %c0_i32 = arith.constant 0 : i32
    %0 = arith.cmpi eq, %arg1, %c0_i32 : i32
    %1 = arith.extui %0 : i1 to i32
    %c0_i32_0 = arith.constant 0 : i32
    %2 = arith.cmpi ne, %1, %c0_i32_0 : i32
    scf.if %2 {
      %cst_13 = arith.constant 0.000000e+00 : f32
      %43 = vector.broadcast %cst_13 : f32 to vector<16x128xf32>
      %c0_14 = arith.constant 0 : index
      %c0_15 = arith.constant 0 : index
      %44 = vector.load %arg6[%c0_14, %c0_15] : memref<16x128xf32, #tpu.memory_space<vmem>>, vector<16x128xf32>
      tpu.vector_store %arg6[%c0_14, %c0_15], %43 {strides = array<i32>} : memref<16x128xf32, #tpu.memory_space<vmem>>, vector<16x128xf32>,
    } else {
    }
    %c0 = arith.constant 0 : index
    %c0_1 = arith.constant 0 : index
    %3 = vector.load %arg2[%c0, %c0_1] : memref<16x4xi32, #tpu.memory_space<vmem>>, vector<16x4xi32>
    %c256_i32 = arith.constant 256 : i32
    %4 = arith.muli %arg1, %c256_i32 : i32
    %5 = tpu.iota {dimensions = array<i32: 1>} : vector<16x256xi32>
    %6 = vector.broadcast %4 : i32 to vector<16x256xi32>
    %7 = arith.addi %6, %5 : vector<16x256xi32>
    %8 = vector.extract_strided_slice %3 {offsets = [0, 0], sizes = [16, 1], strides = [1, 1]} : vector<16x4xi32> to vector<16x1xi32>
    %9 = vector.broadcast %8 : vector<16x1xi32> to vector<16x256xi32>
    %10 = arith.cmpi eq, %9, %7 : vector<16x256xi32>
    %11 = arith.extui %10 : vector<16x256xi1> to vector<16x256xi32>
    %12 = arith.sitofp %11 : vector<16x256xi32> to vector<16x256xf32>
    %13 = vector.extract_strided_slice %3 {offsets = [0, 1], sizes = [16, 1], strides = [1, 1]} : vector<16x4xi32> to vector<16x1xi32>
    %14 = vector.broadcast %13 : vector<16x1xi32> to vector<16x256xi32>
    %15 = arith.cmpi eq, %14, %7 : vector<16x256xi32>
    %16 = arith.extui %15 : vector<16x256xi1> to vector<16x256xi32>
    %17 = arith.sitofp %16 : vector<16x256xi32> to vector<16x256xf32>
    %18 = arith.addf %12, %17 : vector<16x256xf32>
    %19 = vector.extract_strided_slice %3 {offsets = [0, 2], sizes = [16, 1], strides = [1, 1]} : vector<16x4xi32> to vector<16x1xi32>
    %20 = vector.broadcast %19 : vector<16x1xi32> to vector<16x256xi32>
    %21 = arith.cmpi eq, %20, %7 : vector<16x256xi32>
    %22 = arith.extui %21 : vector<16x256xi1> to vector<16x256xi32>
    %23 = arith.sitofp %22 : vector<16x256xi32> to vector<16x256xf32>
    %24 = arith.addf %18, %23 : vector<16x256xf32>
    %25 = vector.extract_strided_slice %3 {offsets = [0, 3], sizes = [16, 1], strides = [1, 1]} : vector<16x4xi32> to vector<16x1xi32>
    %26 = vector.broadcast %25 : vector<16x1xi32> to vector<16x256xi32>
    %27 = arith.cmpi eq, %26, %7 : vector<16x256xi32>
    %28 = arith.extui %27 : vector<16x256xi1> to vector<16x256xi32>
    %29 = arith.sitofp %28 : vector<16x256xi32> to vector<16x256xf32>
    %30 = arith.addf %24, %29 : vector<16x256xf32>
    %31 = arith.truncf %30 : vector<16x256xf32> to vector<16x256xbf16>
    %c0_2 = arith.constant 0 : index
    %c0_3 = arith.constant 0 : index
    %32 = vector.load %arg6[%c0_2, %c0_3] : memref<16x128xf32, #tpu.memory_space<vmem>>, vector<16x128xf32>
    %c0_4 = arith.constant 0 : index
    %c0_5 = arith.constant 0 : index
    %33 = vector.load %arg3[%c0_4, %c0_5] : memref<256x128xbf16, #tpu.memory_space<vmem>>, vector<256x128xbf16>
    %cst = arith.constant dense<0.000000e+00> : vector<16x128xf32>
    %34 = tpu.matmul %31, %33, %cst {dimension_numbers = #tpu.dot_dimension_numbers<[1], [0], [0], [1], [0, 0, 1, 1], [], []>} : vector<16x256xbf16>, vector<256x128xbf16>, vector<16x128xf32> -> vector<16x128xf32>
    %c0_6 = arith.constant 0 : index
    %c0_7 = arith.constant 0 : index
    %35 = vector.load %arg4[%c0_6, %c0_7] : memref<256x128xbf16, #tpu.memory_space<vmem>>, vector<256x128xbf16>
    %cst_8 = arith.constant dense<0.000000e+00> : vector<16x128xf32>
    %36 = tpu.matmul %31, %35, %cst_8 {dimension_numbers = #tpu.dot_dimension_numbers<[1], [0], [0], [1], [0, 0, 1, 1], [], []>} : vector<16x256xbf16>, vector<256x128xbf16>, vector<16x128xf32> -> vector<16x128xf32>
    %37 = arith.addf %34, %36 : vector<16x128xf32>
    %38 = arith.addf %32, %37 : vector<16x128xf32>
    %c0_9 = arith.constant 0 : index
    %c0_10 = arith.constant 0 : index
    %39 = vector.load %arg6[%c0_9, %c0_10] : memref<16x128xf32, #tpu.memory_space<vmem>>, vector<16x128xf32>
    tpu.vector_store %arg6[%c0_9, %c0_10], %38 {strides = array<i32>} : memref<16x128xf32, #tpu.memory_space<vmem>>, vector<16x128xf32>,
    %c0_i32_11 = arith.constant 0 : i32
    %40 = arith.cmpi eq, %arg1, %c0_i32_11 : i32
    %41 = arith.extui %40 : i1 to i32
    %c0_i32_12 = arith.constant 0 : i32
    %42 = arith.cmpi ne, %41, %c0_i32_12 : i32
    scf.if %42 {
      %c0_13 = arith.constant 0 : index
      %c0_14 = arith.constant 0 : index
      %43 = vector.load %arg6[%c0_13, %c0_14] : memref<16x128xf32, #tpu.memory_space<vmem>>, vector<16x128xf32>
      %c0_15 = arith.constant 0 : index
      %c0_16 = arith.constant 0 : index
      %44 = vector.load %arg5[%c0_15, %c0_16] : memref<16x128xf32, #tpu.memory_space<vmem>>, vector<16x128xf32>
      tpu.vector_store %arg5[%c0_15, %c0_16], %43 {strides = array<i32>} : memref<16x128xf32, #tpu.memory_space<vmem>>, vector<16x128xf32>,
    } else {
    }
    return
  }
  func.func @transform_0(%arg0: i32, %arg1: i32) -> (i32, i32) {
    %c0_i32 = arith.constant 0 : i32
    %c0_i32_0 = arith.constant 0 : i32
    return %arg0, %c0_i32 : i32, i32
  }
  func.func @transform_1(%arg0: i32, %arg1: i32) -> (i32, i32) {
    %c0_i32 = arith.constant 0 : i32
    %c0_i32_0 = arith.constant 0 : i32
    return %arg1, %c0_i32 : i32, i32
  }
  func.func @transform_2(%arg0: i32, %arg1: i32) -> (i32, i32) {
    %c0_i32 = arith.constant 0 : i32
    %c0_i32_0 = arith.constant 0 : i32
    return %arg1, %c0_i32 : i32, i32
  }
  func.func @transform_3(%arg0: i32, %arg1: i32) -> (i32, i32) {
    %c0_i32 = arith.constant 0 : i32
    %c0_i32_0 = arith.constant 0 : i32
    return %arg0, %c0_i32 : i32, i32
  }
}

</mosaic_0001>

<bundles_post_ra>
// kernel: tpu_custom_call.1
= control target key start
LH: loop header
LB: loop body
LE: loop exit
PB: predicated region body
PF: predicated region fallthrough
CT: control target
= control target key end

     0   :  { %8 = vsyncpa [#allocation4], 0  ;;  %s802_s0 = inlined_call_operand.vmem [shape: s32[16,4], index: 0, kind: input, shape index: {}]   ;;  %s803_s1 = inlined_call_operand.hbm [shape: bf16[256,128], index: 1, kind: input, shape index: {}]   ;;  %s804_s2 = inlined_call_operand.hbm [shape: bf16[256,128], index: 2, kind: input, shape index: {}]   ;;  %s805_s3 = inlined_call_operand.hbm [shape: f32[16,128], index: 3, kind: output, shape index: {}]  }
   0x1   :  { %9 = vsyncpa [#allocation7], 0 }
   0x2   :  { %10 = vsyncpa [#allocation5], 0  ;;  %s728_s12 = smov [#allocation3]   ;;  %s656_s16 = scalar_lea.hbm %s803_s1, 2048 }
   0x3   :  { %s18_s13 = sshll.u32 %s728_s12, 4  ;;  %p657_p0 = scmp.ne.s32.totalorder %s803_s1, %s656_s16  ;;  %s19_s13 = int_to_ptr.vmem [resolvable:$true] %s18_s13 }
   0x4   :  { %p660_p1 = scmp.lt.u32.totalorder %s656_s16, %s803_s1 }
   0x6   :  { %p662_p2 = pnand %p660_p1, %p657_p0 }
   0x8   :  { %665 = shalt.err (!%p662_p2)
}
   0x9   :  { %s666_s21 = scalar_lea.vmem %s19_s13, 2048  ;;  %p671_p4 = scmp.lt.s32.totalorder %s19_s13, %s19_s13 }
   0xa   :  { %p667_p3 = scmp.ne.s32.totalorder %s19_s13, %s666_s21  ;;  %p672_p5 = scmp.lt.s32.totalorder %s666_s21, %s666_s21 }
   0xc   :  { %p673_p6 = por %p672_p5, %p671_p4 }
   0xe   :  { %p674_p7 = pnand %p673_p6, %p667_p3 }
  0x10   :  { %677 = shalt.err (!%p674_p7)
}
  0x11   :  { %s729_s22 = smov 64   ;;  %s730_s23 = smov 4  }
  0x12   :  { %24 = dma.hbm_to_vmem [thread:$0]  %s803_s1, 2048, %s19_s13, [#allocation4], %s729_s22, %s729_s22, %s730_s23  }
  0x13   :  { %s731_s26 = smov [#allocation6]   ;;  %s678_s30 = scalar_lea.hbm %s804_s2, 2048 }
  0x14   :  { %s30_s27 = sshll.u32 %s731_s26, 4  ;;  %p679_p8 = scmp.ne.s32.totalorder %s804_s2, %s678_s30  ;;  %s31_s27 = int_to_ptr.vmem [resolvable:$true] %s30_s27 }
  0x15   :  { %p682_p9 = scmp.lt.u32.totalorder %s678_s30, %s804_s2 }
  0x17   :  { %p684_p10 = pnand %p682_p9, %p679_p8 }
  0x19   :  { %687 = shalt.err (!%p684_p10)
}
  0x1a   :  { %s688_s8 = scalar_lea.vmem %s31_s27, 2048  ;;  %p693_p12 = scmp.lt.s32.totalorder %s31_s27, %s31_s27 }
  0x1b   :  { %p689_p11 = scmp.ne.s32.totalorder %s31_s27, %s688_s8  ;;  %p694_p13 = scmp.lt.s32.totalorder %s688_s8, %s688_s8 }
  0x1d   :  { %p695_p0 = por %p694_p13, %p693_p12 }
  0x1f   :  { %p696_p1 = pnand %p695_p0, %p689_p11 }
  0x21   :  { %699 = shalt.err (!%p696_p1)
}
  0x22   :  { %36 = dma.hbm_to_vmem [thread:$0]  %s804_s2, 2048, %s31_s27, [#allocation7], %s729_s22, %s729_s22, %s730_s23  }
  0x23   :  { %722 = dma.done.wait [#allocation4], 2048  }
  0x24   :  { %723 = vsyncadd [#allocation4], 4294965248 }
  0x25   :  { %724 = dma.done.wait [#allocation7], 2048  }
  0x26   :  { %725 = vsyncadd [#allocation7], 4294965248  ;;  %v732_v0 = vmov 1   ;;  %v733_v1 = vmov 0   ;;  %v50_v2 = vld [vmem:[%s802_s0] sm:$0xff]  ;;  %v51_v3 = vld [vmem:[%s802_s0 + $0x8] sm:$0xff]  ;;  %v53_v38 = vlaneseq }
  0x27   :  { %619 = vset.pattern.permute.xlu1 %v732_v0  ;;  %618 = vset.pattern.permute.xlu0 %v733_v1  ;;  %v624_v4 = vld [vmem:[#allocation6 + $0x40] sm:$0xff]   ;;  %v628_v8 = vld [vmem:[#allocation6 + $0x48] sm:$0xff]   ;;  %v734_v12 = vmov 2   ;;  %v632_v13 = vld [vmem:[#allocation6 + $0x50] sm:$0xff]   ;;  %v735_v18 = vmov 3   ;;  %v736_v45 = vmov 0.0  }
  0x28   :  { %78 = vperm.xlu1 %619, %v50_v2   ;;  %60 = vperm.xlu0 %618, %v50_v2   ;;  %v625_v5 = vld [vmem:[#allocation3 + $0x40] sm:$0xff]   ;;  %v629_v9 = vld [vmem:[#allocation3 + $0x48] sm:$0xff]   ;;  %v633_v14 = vld [vmem:[#allocation3 + $0x50] sm:$0xff]   ;;  %v54_v39 = vand.u32 127, %v53_v38  ;;  %s737_s0 = smov [#allocation8]  }
  0x29   :  { %562 = vmatprep.subr.bf16.mxu0 %v624_v4  ;;  %v626_v6 = vld [vmem:[#allocation6] sm:$0xff]   ;;  %584 = vmatprep.subr.bf16.mxu1 %v625_v5  ;;  %v630_v10 = vld [vmem:[#allocation6 + $0x8] sm:$0xff]   ;;  %v634_v15 = vld [vmem:[#allocation6 + $0x10] sm:$0xff]   ;;  %s501_s2 = sshll.u32 %s737_s0, 4  ;;  %s502_s2 = int_to_ptr.vmem [resolvable:$true] %s501_s2 }
  0x2a   :  { %v627_v7 = vld [vmem:[#allocation3] sm:$0xff]   ;;  %563 = vmatpush3.bf16.msra.mxu0 %v626_v6  ;;  %v631_v11 = vld [vmem:[#allocation3 + $0x8] sm:$0xff]   ;;  %v635_v16 = vld [vmem:[#allocation3 + $0x10] sm:$0xff]   ;;  %v55_v42 = vadd.s32 128, %v54_v39  ;;  %s700_s14 = scalar_lea.vmem %s502_s2, 256  ;;  %p705_p3 = scmp.lt.s32.totalorder %s502_s2, %s502_s2 }
  0x2b   :  { %585 = vmatpush3.bf16.msra.mxu1 %v627_v7  ;;  %564 = vmatprep.subr.bf16.mxu0 %v628_v8  ;;  %v636_v17 = vld [vmem:[#allocation6 + $0x58] sm:$0xff]   ;;  %v640_v22 = vld [vmem:[#allocation6 + $0x60] sm:$0xff]   ;;  %v644_v26 = vld [vmem:[#allocation6 + $0x68] sm:$0xff]   ;;  %p701_p2 = scmp.ne.s32.totalorder %s502_s2, %s700_s14  ;;  %p706_p4 = scmp.lt.s32.totalorder %s700_s14, %s700_s14 }
  0x2c   :  { %81 = vperm.xlu1 %619, %v51_v3   ;;  %63 = vperm.xlu0 %618, %v51_v3   ;;  %v637_v19 = vld [vmem:[#allocation3 + $0x58] sm:$0xff]   ;;  %v641_v23 = vld [vmem:[#allocation3 + $0x60] sm:$0xff]   ;;  %v645_v27 = vld [vmem:[#allocation3 + $0x68] sm:$0xff]  }
  0x2d   :  { %586 = vmatprep.subr.bf16.mxu1 %v629_v9  ;;  %v638_v20 = vld [vmem:[#allocation6 + $0x18] sm:$0xff]   ;;  %v642_v24 = vld [vmem:[#allocation6 + $0x20] sm:$0xff]   ;;  %v646_v28 = vld [vmem:[#allocation6 + $0x28] sm:$0xff]   ;;  %p707_p5 = por %p706_p4, %p705_p3 }
  0x2e   :  { %565 = vmatpush3.bf16.msra.mxu0 %v630_v10  ;;  %v639_v21 = vld [vmem:[#allocation3 + $0x18] sm:$0xff]   ;;  %v643_v25 = vld [vmem:[#allocation3 + $0x20] sm:$0xff]   ;;  %v647_v29 = vld [vmem:[#allocation3 + $0x28] sm:$0xff]  }
  0x2f   :  { %587 = vmatpush3.bf16.msra.mxu1 %v631_v11  ;;  %566 = vmatprep.subr.bf16.mxu0 %v632_v13  ;;  %v648_v30 = vld [vmem:[#allocation6 + $0x70] sm:$0xff]   ;;  %v652_v34 = vld [vmem:[#allocation6 + $0x78] sm:$0xff]   ;;  %p708_p6 = pnand %p707_p5, %p701_p2 }
  0x30   :  { %621 = vset.pattern.permute.xlu1 %v734_v12  ;;  %620 = vset.pattern.permute.xlu0 %v734_v12  ;;  %v649_v31 = vld [vmem:[#allocation3 + $0x70] sm:$0xff]   ;;  %v653_v35 = vld [vmem:[#allocation3 + $0x78] sm:$0xff]  }
  0x31   :  { %103 = vperm.xlu1 %621, %v51_v3   ;;  %100 = vperm.xlu0 %620, %v50_v2   ;;  %v650_v32 = vld [vmem:[#allocation6 + $0x30] sm:$0xff]   ;;  %v654_v36 = vld [vmem:[#allocation6 + $0x38] sm:$0xff]  }
  0x32   :  { %588 = vmatprep.subr.bf16.mxu1 %v633_v14  ;;  %567 = vmatpush3.bf16.msra.mxu0 %v634_v15  ;;  %v651_v33 = vld [vmem:[#allocation3 + $0x30] sm:$0xff]   ;;  %v655_v37 = vld [vmem:[#allocation3 + $0x38] sm:$0xff]  }
  0x33   :  { %589 = vmatpush3.bf16.msra.mxu1 %v635_v16  ;;  %568 = vmatprep.subr.bf16.mxu0 %v636_v17 }
  0x34   :  { %590 = vmatprep.subr.bf16.mxu1 %v637_v19 }
  0x35   :  { %622 = vset.pattern.permute.xlu1 %v735_v18  ;;  %623 = vset.pattern.permute.xlu0 %v735_v18 }
  0x36   :  { %122 = vperm.xlu1 %622, %v50_v2   ;;  %125 = vperm.xlu0 %623, %v51_v3  }
  0x37   :  { %569 = vmatpush3.bf16.msra.mxu0 %v638_v20  ;;  %591 = vmatpush3.bf16.msra.mxu1 %v639_v21 }
  0x38   :  { %570 = vmatprep.subr.bf16.mxu0 %v640_v22  ;;  %592 = vmatprep.subr.bf16.mxu1 %v641_v23 }
  0x3b   :  { %571 = vmatpush3.bf16.msra.mxu0 %v642_v24  ;;  %593 = vmatpush3.bf16.msra.mxu1 %v643_v25 }
  0x3c   :  { %572 = vmatprep.subr.bf16.mxu0 %v644_v26  ;;  %594 = vmatprep.subr.bf16.mxu1 %v645_v27 }
  0x3f   :  { %573 = vmatpush3.bf16.msra.mxu0 %v646_v28  ;;  %595 = vmatpush3.bf16.msra.mxu1 %v647_v29 }
  0x40   :  { %574 = vmatprep.subr.bf16.mxu0 %v648_v30  ;;  %596 = vmatprep.subr.bf16.mxu1 %v649_v31 }
  0x43   :  { %575 = vmatpush3.bf16.msra.mxu0 %v650_v32  ;;  %597 = vmatpush3.bf16.msra.mxu1 %v651_v33 }
  0x44   :  { %576 = vmatprep.subr.bf16.mxu0 %v652_v34  ;;  %598 = vmatprep.subr.bf16.mxu1 %v653_v35 }
  0x47   :  { %577 = vmatpush3.bf16.msra.mxu0 %v654_v36  ;;  %599 = vmatpush3.bf16.msra.mxu1 %v655_v37 }
  0xa7   :  { %v79_v40 = vpop.permute.xlu1 %78  ;;  %v61_v41 = vpop.permute.xlu0 %60 }
  0xa8   :  { %vm83_vm0 = vcmp.eq.s32.totalorder %v79_v40, %v54_v39  ;;  %vm84_vm1 = vcmp.eq.s32.totalorder %v79_v40, %v55_v42  ;;  %vm65_vm2 = vcmp.eq.s32.totalorder %v61_v41, %v54_v39  ;;  %vm66_vm3 = vcmp.eq.s32.totalorder %v61_v41, %v55_v42 }
  0xa9   :  { %v518_v46 = vsel %vm83_vm0, 1.0, %v736_v45  ;;  %v519_v47 = vsel %vm84_vm1, 1.0, %v736_v45  ;;  %v514_v48 = vsel %vm65_vm2, 1.0, %v736_v45  ;;  %v515_v49 = vsel %vm66_vm3, 1.0, %v736_v45 }
  0xaa   :  { %v95_v60 = vadd.f32 %v518_v46, %v514_v48  ;;  %v96_v61 = vadd.f32 %v519_v47, %v515_v49 }
  0xab   :  { %v82_v43 = vpop.permute.xlu1 %81  ;;  %v64_v44 = vpop.permute.xlu0 %63 }
  0xac   :  { %vm85_vm4 = vcmp.eq.s32.totalorder %v82_v43, %v54_v39  ;;  %vm86_vm5 = vcmp.eq.s32.totalorder %v82_v43, %v55_v42  ;;  %vm67_vm6 = vcmp.eq.s32.totalorder %v64_v44, %v54_v39  ;;  %vm68_vm7 = vcmp.eq.s32.totalorder %v64_v44, %v55_v42 }
  0xad   :  { %v520_v50 = vsel %vm85_vm4, 1.0, %v736_v45  ;;  %v521_v51 = vsel %vm86_vm5, 1.0, %v736_v45  ;;  %v516_v52 = vsel %vm67_vm6, 1.0, %v736_v45  ;;  %v517_v53 = vsel %vm68_vm7, 1.0, %v736_v45 }
  0xae   :  { %v97_v62 = vadd.f32 %v520_v50, %v516_v52  ;;  %v98_v63 = vadd.f32 %v521_v51, %v517_v53 }
  0xb0   :  { %v104_v54 = vpop.permute.xlu1 %103  ;;  %v101_v55 = vpop.permute.xlu0 %100 }
  0xb1   :  { %vm107_vm8 = vcmp.eq.s32.totalorder %v104_v54, %v54_v39  ;;  %vm108_vm9 = vcmp.eq.s32.totalorder %v104_v54, %v55_v42  ;;  %vm105_vm10 = vcmp.eq.s32.totalorder %v101_v55, %v54_v39  ;;  %vm106_vm11 = vcmp.eq.s32.totalorder %v101_v55, %v55_v42 }
  0xb2   :  { %v524_v56 = vsel %vm107_vm8, 1.0, %v736_v45  ;;  %v525_v57 = vsel %vm108_vm9, 1.0, %v736_v45  ;;  %v522_v58 = vsel %vm105_vm10, 1.0, %v736_v45  ;;  %v523_v59 = vsel %vm106_vm11, 1.0, %v736_v45 }
  0xb3   :  { %v119_v0 = vadd.f32 %v524_v56, %v97_v62  ;;  %v120_v1 = vadd.f32 %v525_v57, %v98_v63  ;;  %v117_v2 = vadd.f32 %v522_v58, %v95_v60  ;;  %v118_v3 = vadd.f32 %v523_v59, %v96_v61 }
  0xb5   :  { %v123_v4 = vpop.permute.xlu1 %122  ;;  %v126_v5 = vpop.permute.xlu0 %125 }
  0xb6   :  { %vm127_vm12 = vcmp.eq.s32.totalorder %v123_v4, %v54_v39  ;;  %vm128_vm13 = vcmp.eq.s32.totalorder %v123_v4, %v55_v42  ;;  %vm129_vm14 = vcmp.eq.s32.totalorder %v126_v5, %v54_v39  ;;  %vm130_vm15 = vcmp.eq.s32.totalorder %v126_v5, %v55_v42 }
  0xb7   :  { %v526_v6 = vsel %vm127_vm12, 1.0, %v736_v45  ;;  %v527_v7 = vsel %vm128_vm13, 1.0, %v736_v45  ;;  %v528_v8 = vsel %vm129_vm14, 1.0, %v736_v45  ;;  %v529_v9 = vsel %vm130_vm15, 1.0, %v736_v45 }
  0xb8   :  { %v139_v10 = vadd.f32 %v526_v6, %v117_v2  ;;  %v140_v11 = vadd.f32 %v527_v7, %v118_v3  ;;  %v141_v12 = vadd.f32 %v528_v8, %v119_v0  ;;  %v142_v13 = vadd.f32 %v529_v9, %v120_v1 }
  0xba   :  { %v144_v14 = vpack.c.bf16 %v142_v13, %v140_v11  ;;  %v143_v15 = vpack.c.bf16 %v141_v12, %v139_v10 }
  0xbc   :  { %339 = vmatprep.mubr.bf16.mxu0 %v144_v14  ;;  %476 = vmatprep.mubr.bf16.mxu1 %v144_v14 }
  0xbd   :  { %340 = vmatmul.mubr.bf16.vlgmr.msra.gmra.mrb[0].mxu0 %v143_v15  ;;  %477 = vmatmul.mubr.bf16.vlgmr.msra.gmra.mrb[0].mxu1 %v143_v15 }
 0x190   :  { %v578_v16 = vpop.f32.mrb[0].mxu0  ;;  %v600_v17 = vpop.f32.mrb[0].mxu1 }
 0x191   :  { %v579_v18 = vpop.f32.mrb[1].mxu0  ;;  %v601_v19 = vpop.f32.mrb[1].mxu1 }
 0x192   :  { %v580_v20 = vadd.f32 %v579_v18, %v578_v16  ;;  %v602_v21 = vadd.f32 %v601_v19, %v600_v17  ;;  %v581_v22 = vpop.f32.mrb[2].mxu0  ;;  %v603_v23 = vpop.f32.mrb[2].mxu1 }
 0x193   :  { %v582_v24 = vpop.f32.mrb[3].mxu0  ;;  %v604_v25 = vpop.f32.mrb[3].mxu1 }
 0x194   :  { %v479_v26 = vadd.f32 %v602_v21, %v580_v20  ;;  %v583_v27 = vadd.f32 %v582_v24, %v581_v22  ;;  %v605_v28 = vadd.f32 %v604_v25, %v603_v23 }
 0x196   :  { %494 = vst [vmem:[#allocation8] sm:$0xff] %v479_v26  ;;  %v482_v29 = vadd.f32 %v605_v28, %v583_v27 }
 0x198   :  { %495 = vst [vmem:[#allocation8 + $0x8] sm:$0xff] %v482_v29 }
 0x199   :  { %711 = shalt.err (!%p708_p6)
}
 0x19a   :  { %s712_s17 = scalar_lea.hbm %s805_s3, 256 }
 0x19b   :  { %p713_p7 = scmp.ne.s32.totalorder %s805_s3, %s712_s17  ;;  %p716_p8 = scmp.lt.u32.totalorder %s712_s17, %s805_s3 }
 0x19d   :  { %p718_p9 = pnand %p716_p8, %p713_p7 }
 0x19f   :  { %721 = shalt.err (!%p718_p9)
}
 0x1a0   :  { %s738_s22 = smov 128   ;;  %s739_s23 = smov 8  }
 0x1a1   :  { %507 = dma.vmem_to_hbm [thread:$0]  %s502_s2, 256, %s805_s3, [#allocation5], %s738_s22, %s738_s22, %s739_s23  }
 0x1a2   :  { %726 = dma.done.wait [#allocation5], 256  }
 0x1a3   :  { %727 = vsyncadd [#allocation5], 4294967040 }
 0x1a4   :  { %511 = vsyncpa [#allocation4], 1 }
 0x1a5   :  { %512 = vsyncpa [#allocation7], 1 }
 0x1a6   :  { %513 = vsyncpa [#allocation5], 1 }

</bundles_post_ra>
